<compile_context>
chip_gen: v5e
topology: v5e:2x2
jax: 0.10.0
libtpu: 0.0.40
codegen_flags: <defaults>
</compile_context>

<pallas_src>
import jax
import jax.numpy as jnp
from jax.experimental import pallas as pl
from jax.experimental.pallas import tpu as pltpu

D_IN = 12    # fc1 in_features
D_HID = 19   # fc1/fc2 out_features
D_EX = 7     # fc_ex out_features
D_AU = 12    # fc_au out_features
LANE = 128   # lane-dense padded width for every feature dimension


def mlp_ex_au_kernel(x_ref, w1_ref, b1_ref, w2_ref, b2_ref,
                     wex_ref, bex_ref, wau_ref, bau_ref,
                     oex_ref, oau_ref):
    # fc1: Linear(12 -> 19), padded to (128 -> 128)
    h = jnp.dot(x_ref[...], w1_ref[...], preferred_element_type=jnp.float32)
    h = h + b1_ref[...]
    # fc2: Linear(19 -> 19)
    h = jnp.dot(h, w2_ref[...], preferred_element_type=jnp.float32) + b2_ref[...]
    # fc_ex head: Linear(19 -> 7)
    oex_ref[...] = (jnp.dot(h, wex_ref[...], preferred_element_type=jnp.float32)
                    + bex_ref[...]).astype(oex_ref.dtype)
    # fc_au head: Linear(19 -> 12)
    oau_ref[...] = (jnp.dot(h, wau_ref[...], preferred_element_type=jnp.float32)
                    + bau_ref[...]).astype(oau_ref.dtype)


def _pad2(a, rows, cols):
    """Zero-pad a 2-D array up to (rows, cols)."""
    out = jnp.zeros((rows, cols), a.dtype)
    return out.at[:a.shape[0], :a.shape[1]].set(a)


def mlp_ex_au_forward(x, params, *, tm=128):
    """x: (B, 12) float32. Returns (out_ex (B,7), out_au (B,12))."""
    B = x.shape[0]
    n_blocks = pl.cdiv(B, tm)
    Bp = n_blocks * tm

    # Host-side zero padding: batch -> TM multiple, features -> 128 lanes.
    xp = jnp.zeros((Bp, LANE), jnp.float32).at[:B, :D_IN].set(x)
    w1 = _pad2(params["w1"], LANE, LANE)
    b1 = _pad2(params["b1"], 1, LANE)
    w2 = _pad2(params["w2"], LANE, LANE)
    b2 = _pad2(params["b2"], 1, LANE)
    wex = _pad2(params["w_ex"], LANE, LANE)
    bex = _pad2(params["b_ex"], 1, LANE)
    wau = _pad2(params["w_au"], LANE, LANE)
    bau = _pad2(params["b_au"], 1, LANE)

    row_spec = pl.BlockSpec((tm, LANE), lambda i: (i, 0))     # batch-tiled
    w_spec = pl.BlockSpec((LANE, LANE), lambda i: (0, 0))     # resident weights
    b_spec = pl.BlockSpec((1, LANE), lambda i: (0, 0))        # resident biases

    flops = 4 * 2 * Bp * LANE * LANE                          # 4 matmuls
    bytes_accessed = 4 * (Bp * LANE                           # x in
                          + 4 * LANE * LANE + 4 * LANE        # weights + biases
                          + 2 * Bp * LANE)                    # two outputs

    oex, oau = pl.pallas_call(
        mlp_ex_au_kernel,
        out_shape=(jax.ShapeDtypeStruct((Bp, LANE), jnp.float32),
                   jax.ShapeDtypeStruct((Bp, LANE), jnp.float32)),
        grid=(n_blocks,),
        in_specs=[row_spec,
                  w_spec, b_spec,
                  w_spec, b_spec,
                  w_spec, b_spec,
                  w_spec, b_spec],
        out_specs=(row_spec, row_spec),
        compiler_params=pltpu.CompilerParams(
            dimension_semantics=("parallel",)),
        cost_estimate=pl.CostEstimate(flops=flops, transcendentals=0,
                                      bytes_accessed=bytes_accessed),
    )(xp, w1, b1, w2, b2, wex, bex, wau, bau)

    # Slice away batch padding and lane padding.
    return oex[:B, :D_EX], oau[:B, :D_AU]


def init_params(key):
    k = jax.random.split(key, 8)
    return dict(
        w1=jax.random.normal(k[0], (D_IN, D_HID), jnp.float32) * 0.1,
        b1=jax.random.normal(k[1], (1, D_HID), jnp.float32) * 0.01,
        w2=jax.random.normal(k[2], (D_HID, D_HID), jnp.float32) * 0.1,
        b2=jax.random.normal(k[3], (1, D_HID), jnp.float32) * 0.01,
        w_ex=jax.random.normal(k[4], (D_HID, D_EX), jnp.float32) * 0.1,
        b_ex=jax.random.normal(k[5], (1, D_EX), jnp.float32) * 0.01,
        w_au=jax.random.normal(k[6], (D_HID, D_AU), jnp.float32) * 0.1,
        b_au=jax.random.normal(k[7], (1, D_AU), jnp.float32) * 0.01,
    )


if __name__ == "__main__":
    key = jax.random.PRNGKey(0)
    kx, kp = jax.random.split(key)
    B = 2
    x = jax.random.normal(kx, (B, D_IN), jnp.float32)
    params = init_params(kp)

    out_ex, out_au = mlp_ex_au_forward(x, params)
    out_ex, out_au = jax.block_until_ready((out_ex, out_au))

    # Pure-JAX reference (same math as torch.nn.Linear with transposed weights).
    h = x @ params["w1"] + params["b1"]
    h = h @ params["w2"] + params["b2"]
    ref_ex = h @ params["w_ex"] + params["b_ex"]
    ref_au = h @ params["w_au"] + params["b_au"]

    assert out_ex.shape == (B, D_EX), out_ex.shape
    assert out_au.shape == (B, D_AU), out_au.shape
    assert jnp.allclose(out_ex, ref_ex, atol=1e-4, rtol=1e-4)
    assert jnp.allclose(out_au, ref_au, atol=1e-4, rtol=1e-4)
    print("KERNEL_OK")
</pallas_src>

<mosaic_0001>
module attributes {stable_mosaic.version = 11 : i64} {
  func.func @mlp_ex_au_kernel(%arg0: i32, %arg1: memref<128x128xf32, #tpu.memory_space<vmem>>, %arg2: memref<128x128xf32, #tpu.memory_space<vmem>>, %arg3: memref<1x128xf32, #tpu.memory_space<vmem>>, %arg4: memref<128x128xf32, #tpu.memory_space<vmem>>, %arg5: memref<1x128xf32, #tpu.memory_space<vmem>>, %arg6: memref<128x128xf32, #tpu.memory_space<vmem>>, %arg7: memref<1x128xf32, #tpu.memory_space<vmem>>, %arg8: memref<128x128xf32, #tpu.memory_space<vmem>>, %arg9: memref<1x128xf32, #tpu.memory_space<vmem>>, %arg10: memref<128x128xf32, #tpu.memory_space<vmem>>, %arg11: memref<128x128xf32, #tpu.memory_space<vmem>>) attributes {dimension_semantics = [#tpu.dimension_semantics<parallel>], iteration_bounds = array<i64: 1>, scalar_prefetch = 0 : i64, scratch_operands = 0 : i64, tpu.core_type = #tpu.core_type<tc>, window_params = [{transform_indices = @transform_0, window_bounds = array<i64: 128, 128>}, {pipeline_mode = #tpu.pipeline_mode<synchronous>, transform_indices = @transform_1, window_bounds = array<i64: 128, 128>}, {pipeline_mode = #tpu.pipeline_mode<synchronous>, transform_indices = @transform_2, window_bounds = array<i64: 1, 128>}, {pipeline_mode = #tpu.pipeline_mode<synchronous>, transform_indices = @transform_3, window_bounds = array<i64: 128, 128>}, {pipeline_mode = #tpu.pipeline_mode<synchronous>, transform_indices = @transform_4, window_bounds = array<i64: 1, 128>}, {pipeline_mode = #tpu.pipeline_mode<synchronous>, transform_indices = @transform_5, window_bounds = array<i64: 128, 128>}, {pipeline_mode = #tpu.pipeline_mode<synchronous>, transform_indices = @transform_6, window_bounds = array<i64: 1, 128>}, {pipeline_mode = #tpu.pipeline_mode<synchronous>, transform_indices = @transform_7, window_bounds = array<i64: 128, 128>}, {pipeline_mode = #tpu.pipeline_mode<synchronous>, transform_indices = @transform_8, window_bounds = array<i64: 1, 128>}, {transform_indices = @transform_9, window_bounds = array<i64: 128, 128>}, {transform_indices = @transform_10, window_bounds = array<i64: 128, 128>}]} {
    %c0 = arith.constant 0 : index
    %c0_0 = arith.constant 0 : index
    %0 = vector.load %arg1[%c0, %c0_0] : memref<128x128xf32, #tpu.memory_space<vmem>>, vector<128x128xf32>
    %c0_1 = arith.constant 0 : index
    %c0_2 = arith.constant 0 : index
    %1 = vector.load %arg2[%c0_1, %c0_2] : memref<128x128xf32, #tpu.memory_space<vmem>>, vector<128x128xf32>
    %cst = arith.constant dense<0.000000e+00> : vector<128x128xf32>
    %2 = tpu.matmul %0, %1, %cst {dimension_numbers = #tpu.dot_dimension_numbers<[1], [0], [0], [1], [0, 0, 1, 1], [], []>} : vector<128x128xf32>, vector<128x128xf32>, vector<128x128xf32> -> vector<128x128xf32>
    %c0_3 = arith.constant 0 : index
    %c0_4 = arith.constant 0 : index
    %3 = vector.load %arg3[%c0_3, %c0_4] : memref<1x128xf32, #tpu.memory_space<vmem>>, vector<1x128xf32>
    %4 = vector.broadcast %3 : vector<1x128xf32> to vector<128x128xf32>
    %5 = arith.addf %2, %4 : vector<128x128xf32>
    %c0_5 = arith.constant 0 : index
    %c0_6 = arith.constant 0 : index
    %6 = vector.load %arg4[%c0_5, %c0_6] : memref<128x128xf32, #tpu.memory_space<vmem>>, vector<128x128xf32>
    %cst_7 = arith.constant dense<0.000000e+00> : vector<128x128xf32>
    %7 = tpu.matmul %5, %6, %cst_7 {dimension_numbers = #tpu.dot_dimension_numbers<[1], [0], [0], [1], [0, 0, 1, 1], [], []>} : vector<128x128xf32>, vector<128x128xf32>, vector<128x128xf32> -> vector<128x128xf32>
    %c0_8 = arith.constant 0 : index
    %c0_9 = arith.constant 0 : index
    %8 = vector.load %arg5[%c0_8, %c0_9] : memref<1x128xf32, #tpu.memory_space<vmem>>, vector<1x128xf32>
    %9 = vector.broadcast %8 : vector<1x128xf32> to vector<128x128xf32>
    %10 = arith.addf %7, %9 : vector<128x128xf32>
    %c0_10 = arith.constant 0 : index
    %c0_11 = arith.constant 0 : index
    %11 = vector.load %arg6[%c0_10, %c0_11] : memref<128x128xf32, #tpu.memory_space<vmem>>, vector<128x128xf32>
    %cst_12 = arith.constant dense<0.000000e+00> : vector<128x128xf32>
    %12 = tpu.matmul %10, %11, %cst_12 {dimension_numbers = #tpu.dot_dimension_numbers<[1], [0], [0], [1], [0, 0, 1, 1], [], []>} : vector<128x128xf32>, vector<128x128xf32>, vector<128x128xf32> -> vector<128x128xf32>
    %c0_13 = arith.constant 0 : index
    %c0_14 = arith.constant 0 : index
    %13 = vector.load %arg7[%c0_13, %c0_14] : memref<1x128xf32, #tpu.memory_space<vmem>>, vector<1x128xf32>
    %14 = vector.broadcast %13 : vector<1x128xf32> to vector<128x128xf32>
    %15 = arith.addf %12, %14 : vector<128x128xf32>
    %c0_15 = arith.constant 0 : index
    %c0_16 = arith.constant 0 : index
    %16 = vector.load %arg10[%c0_15, %c0_16] : memref<128x128xf32, #tpu.memory_space<vmem>>, vector<128x128xf32>
    tpu.vector_store %arg10[%c0_15, %c0_16], %15 {strides = array<i32>} : memref<128x128xf32, #tpu.memory_space<vmem>>, vector<128x128xf32>,
    %c0_17 = arith.constant 0 : index
    %c0_18 = arith.constant 0 : index
    %17 = vector.load %arg8[%c0_17, %c0_18] : memref<128x128xf32, #tpu.memory_space<vmem>>, vector<128x128xf32>
    %cst_19 = arith.constant dense<0.000000e+00> : vector<128x128xf32>
    %18 = tpu.matmul %10, %17, %cst_19 {dimension_numbers = #tpu.dot_dimension_numbers<[1], [0], [0], [1], [0, 0, 1, 1], [], []>} : vector<128x128xf32>, vector<128x128xf32>, vector<128x128xf32> -> vector<128x128xf32>
    %c0_20 = arith.constant 0 : index
    %c0_21 = arith.constant 0 : index
    %19 = vector.load %arg9[%c0_20, %c0_21] : memref<1x128xf32, #tpu.memory_space<vmem>>, vector<1x128xf32>
    %20 = vector.broadcast %19 : vector<1x128xf32> to vector<128x128xf32>
    %21 = arith.addf %18, %20 : vector<128x128xf32>
    %c0_22 = arith.constant 0 : index
    %c0_23 = arith.constant 0 : index
    %22 = vector.load %arg11[%c0_22, %c0_23] : memref<128x128xf32, #tpu.memory_space<vmem>>, vector<128x128xf32>
    tpu.vector_store %arg11[%c0_22, %c0_23], %21 {strides = array<i32>} : memref<128x128xf32, #tpu.memory_space<vmem>>, vector<128x128xf32>,
    return
  }
  func.func @transform_0(%arg0: i32) -> (i32, i32) {
    %c0_i32 = arith.constant 0 : i32
    %c0_i32_0 = arith.constant 0 : i32
    return %arg0, %c0_i32 : i32, i32
  }
  func.func @transform_1(%arg0: i32) -> (i32, i32) {
    %c0_i32 = arith.constant 0 : i32
    %c0_i32_0 = arith.constant 0 : i32
    %c0_i32_1 = arith.constant 0 : i32
    return %c0_i32, %c0_i32_0 : i32, i32
  }
  func.func @transform_2(%arg0: i32) -> (i32, i32) {
    %c0_i32 = arith.constant 0 : i32
    %c0_i32_0 = arith.constant 0 : i32
    %c0_i32_1 = arith.constant 0 : i32
    return %c0_i32, %c0_i32_0 : i32, i32
  }
  func.func @transform_3(%arg0: i32) -> (i32, i32) {
    %c0_i32 = arith.constant 0 : i32
    %c0_i32_0 = arith.constant 0 : i32
    %c0_i32_1 = arith.constant 0 : i32
    return %c0_i32, %c0_i32_0 : i32, i32
  }
  func.func @transform_4(%arg0: i32) -> (i32, i32) {
    %c0_i32 = arith.constant 0 : i32
    %c0_i32_0 = arith.constant 0 : i32
    %c0_i32_1 = arith.constant 0 : i32
    return %c0_i32, %c0_i32_0 : i32, i32
  }
  func.func @transform_5(%arg0: i32) -> (i32, i32) {
    %c0_i32 = arith.constant 0 : i32
    %c0_i32_0 = arith.constant 0 : i32
    %c0_i32_1 = arith.constant 0 : i32
    return %c0_i32, %c0_i32_0 : i32, i32
  }
  func.func @transform_6(%arg0: i32) -> (i32, i32) {
    %c0_i32 = arith.constant 0 : i32
    %c0_i32_0 = arith.constant 0 : i32
    %c0_i32_1 = arith.constant 0 : i32
    return %c0_i32, %c0_i32_0 : i32, i32
  }
  func.func @transform_7(%arg0: i32) -> (i32, i32) {
    %c0_i32 = arith.constant 0 : i32
    %c0_i32_0 = arith.constant 0 : i32
    %c0_i32_1 = arith.constant 0 : i32
    return %c0_i32, %c0_i32_0 : i32, i32
  }
  func.func @transform_8(%arg0: i32) -> (i32, i32) {
    %c0_i32 = arith.constant 0 : i32
    %c0_i32_0 = arith.constant 0 : i32
    %c0_i32_1 = arith.constant 0 : i32
    return %c0_i32, %c0_i32_0 : i32, i32
  }
  func.func @transform_9(%arg0: i32) -> (i32, i32) {
    %c0_i32 = arith.constant 0 : i32
    %c0_i32_0 = arith.constant 0 : i32
    return %arg0, %c0_i32 : i32, i32
  }
  func.func @transform_10(%arg0: i32) -> (i32, i32) {
    %c0_i32 = arith.constant 0 : i32
    %c0_i32_0 = arith.constant 0 : i32
    return %arg0, %c0_i32 : i32, i32
  }
}

</mosaic_0001>

<bundles_post_ra>
// kernel: tpu_custom_call.1
= control target key start
LH: loop header
LB: loop body
LE: loop exit
PB: predicated region body
PF: predicated region fallthrough
CT: control target
= control target key end

     0   :  { %16 = vsyncpa [#allocation3], 0  ;;  %s904_s0 = inlined_call_operand.hbm [shape: f32[128,128], index: 0, kind: input, shape index: {}]   ;;  %s905_s1 = inlined_call_operand.hbm [shape: f32[128,128], index: 1, kind: input, shape index: {}]   ;;  %s906_s2 = inlined_call_operand.vmem [shape: f32[1,128], index: 2, kind: input, shape index: {}]   ;;  %s907_s3 = inlined_call_operand.hbm [shape: f32[128,128], index: 3, kind: input, shape index: {}]   ;;  %s908_s4 = inlined_call_operand.vmem [shape: f32[1,128], index: 4, kind: input, shape index: {}]   ;;  %s909_s5 = inlined_call_operand.hbm [shape: f32[128,128], index: 5, kind: input, shape index: {}]   ;;  %s910_s6 = inlined_call_operand.vmem [shape: f32[1,128], index: 6, kind: input, shape index: {}]   ;;  %s911_s7 = inlined_call_operand.hbm [shape: f32[128,128], index: 7, kind: input, shape index: {}]   ;;  %s912_s8 = inlined_call_operand.vmem [shape: f32[1,128], index: 8, kind: input, shape index: {}]   ;;  %s913_s9 = inlined_call_operand.hbm [shape: f32[128,128], index: 9, kind: output, shape index: {0}]   ;;  %s914_s10 = inlined_call_operand.hbm [shape: f32[128,128], index: 10, kind: output, shape index: {1}]  }
   0x1   :  { %17 = vsyncpa [#allocation6], 0 }
   0x2   :  { %18 = vsyncpa [#allocation9], 0 }
   0x3   :  { %19 = vsyncpa [#allocation4], 0 }
   0x4   :  { %20 = vsyncpa [#allocation13], 0  ;;  %s38_s15 = sshll.u32 %s905_s1, 4  ;;  %s732_s16 = smov [#allocation5]   ;;  %s39_s15 = int_to_ptr.hbm [resolvable:$true] %s38_s15 }
   0x5   :  { %s40_s17 = sshll.u32 %s732_s16, 4  ;;  %s68_s20 = sshll.u32 %s909_s5, 4  ;;  %s41_s17 = int_to_ptr.vmem [resolvable:$true] %s40_s17  ;;  %s69_s20 = int_to_ptr.hbm [resolvable:$true] %s68_s20 }
   0x6   :  { %s733_s21 = smov 128   ;;  %s734_s22 = smov 8  }
   0x7   :  { %46 = dma.hbm_to_vmem [thread:$0]  %s39_s15, 2048, %s41_s17, [#allocation6], %s733_s21, %s733_s21, %s734_s22  }
   0x8   :  { %s735_s23 = smov [#allocation8]   ;;  %s25_s1 = sshll.u32 %s904_s0, 4  ;;  %s26_s1 = int_to_ptr.hbm [resolvable:$true] %s25_s1 }
   0x9   :  { %s70_s24 = sshll.u32 %s735_s23, 4  ;;  %s53_s28 = sshll.u32 %s907_s3, 4  ;;  %s71_s24 = int_to_ptr.vmem [resolvable:$true] %s70_s24  ;;  %s54_s28 = int_to_ptr.hbm [resolvable:$true] %s53_s28 }
   0xa   :  { %76 = dma.hbm_to_vmem [thread:$0]  %s69_s20, 2048, %s71_s24, [#allocation9], %s733_s21, %s733_s21, %s734_s22  }
   0xb   :  { %s736_s29 = smov [#allocation2]   ;;  %s737_s11 = smov [#allocation7]  }
   0xc   :  { %s27_s30 = sshll.u32 %s736_s29, 4  ;;  %s55_s0 = sshll.u32 %s737_s11, 4  ;;  %s28_s30 = int_to_ptr.vmem [resolvable:$true] %s27_s30  ;;  %s56_s0 = int_to_ptr.vmem [resolvable:$true] %s55_s0 }
   0xd   :  { %33 = dma.hbm_to_vmem [thread:$0]  %s26_s1, 2048, %s28_s30, [#allocation3], %s733_s21, %s733_s21, %s734_s22  }
   0xe   :  { %s83_s14 = sshll.u32 %s911_s7, 4  ;;  %s738_s3 = smov [#allocation10]   ;;  %s84_s14 = int_to_ptr.hbm [resolvable:$true] %s83_s14 }
   0xf   :  { %61 = dma.hbm_to_vmem [thread:$0]  %s54_s28, 2048, %s56_s0, [#allocation6], %s733_s21, %s733_s21, %s734_s22  }
  0x10   :  { %s85_s15 = sshll.u32 %s738_s3, 4  ;;  %s86_s15 = int_to_ptr.vmem [resolvable:$true] %s85_s15 }
  0x11   :  { %91 = dma.hbm_to_vmem [thread:$0]  %s84_s14, 2048, %s86_s15, [#allocation9], %s733_s21, %s733_s21, %s734_s22  }
  0x12   :  { %722 = dma.done.wait [#allocation3], 2048  }
  0x13   :  { %723 = vsyncadd [#allocation3], 4294965248 }
  0x14   :  { %724 = dma.done.wait [#allocation6], 4096  }
  0x15   :  { %725 = vsyncadd [#allocation6], 4294963200 }
  0x16   :  { %726 = dma.done.wait [#allocation9], 4096  }
  0x17   :  { %727 = vsyncadd [#allocation9], 4294963200  ;;  %v145_v0 = vld [vmem:[#allocation5 + $0x78] sm:$0xff]  ;;  %v144_v1 = vld [vmem:[#allocation5 + $0x70] sm:$0xff]  ;;  %s508_s25 = sshll.u32 %s913_s9, 4  ;;  %s740_s26 = smov [#allocation12]   ;;  %s509_s25 = int_to_ptr.hbm [resolvable:$true] %s508_s25 }
  0x18   :  { %150 = vmatpush.msra.mxu0 %v145_v0  ;;  %v143_v2 = vld [vmem:[#allocation5 + $0x68] sm:$0xff]  ;;  %v142_v3 = vld [vmem:[#allocation5 + $0x60] sm:$0xff]  ;;  %v141_v4 = vld [vmem:[#allocation5 + $0x58] sm:$0xff]  ;;  %s519_s1 = sshll.u32 %s740_s26, 4  ;;  %s521_s28 = sshll.u32 %s914_s10, 4  ;;  %s520_s1 = int_to_ptr.vmem [resolvable:$true] %s519_s1  ;;  %s522_s28 = int_to_ptr.hbm [resolvable:$true] %s521_s28 }
  0x19   :  { %v140_v5 = vld [vmem:[#allocation5 + $0x50] sm:$0xff]  ;;  %v139_v6 = vld [vmem:[#allocation5 + $0x48] sm:$0xff]  ;;  %v138_v7 = vld [vmem:[#allocation5 + $0x40] sm:$0xff] }
  0x1a   :  { %151 = vmatpush.msra.mxu0 %v144_v1  ;;  %v137_v8 = vld [vmem:[#allocation5 + $0x38] sm:$0xff]  ;;  %v136_v9 = vld [vmem:[#allocation5 + $0x30] sm:$0xff]  ;;  %v135_v10 = vld [vmem:[#allocation5 + $0x28] sm:$0xff] }
  0x1b   :  { %v134_v11 = vld [vmem:[#allocation5 + $0x20] sm:$0xff]  ;;  %v133_v12 = vld [vmem:[#allocation5 + $0x18] sm:$0xff]  ;;  %v132_v13 = vld [vmem:[#allocation5 + $0x10] sm:$0xff] }
  0x1c   :  { %152 = vmatpush.msra.mxu0 %v143_v2  ;;  %v131_v14 = vld [vmem:[#allocation5 + $0x8] sm:$0xff]  ;;  %v130_v15 = vld [vmem:[#allocation5] sm:$0xff]  ;;  %v116_v18 = vld [vmem:[#allocation2 + $0x10] sm:$0xff] }
  0x1d   :  { %v114_v16 = vld [vmem:[#allocation2] sm:$0xff]  ;;  %v115_v17 = vld [vmem:[#allocation2 + $0x8] sm:$0xff]  ;;  %v117_v19 = vld [vmem:[#allocation2 + $0x18] sm:$0xff] }
  0x1e   :  { %153 = vmatpush.msra.mxu0 %v142_v3  ;;  %v118_v20 = vld [vmem:[#allocation2 + $0x20] sm:$0xff]  ;;  %v119_v21 = vld [vmem:[#allocation2 + $0x28] sm:$0xff]  ;;  %v120_v22 = vld [vmem:[#allocation2 + $0x30] sm:$0xff] }
  0x1f   :  { %v121_v23 = vld [vmem:[#allocation2 + $0x38] sm:$0xff]  ;;  %v122_v24 = vld [vmem:[#allocation2 + $0x40] sm:$0xff]  ;;  %v229_v26 = vld [vmem:[#allocation7 + $0x70] sm:$0xff] }
  0x20   :  { %154 = vmatpush.msra.mxu0 %v141_v4  ;;  %v230_v25 = vld [vmem:[#allocation7 + $0x78] sm:$0xff]  ;;  %v228_v27 = vld [vmem:[#allocation7 + $0x68] sm:$0xff]  ;;  %v227_v28 = vld [vmem:[#allocation7 + $0x60] sm:$0xff] }
  0x21   :  { %235 = vmatpush.msra.mxu1 %v230_v25  ;;  %v123_v29 = vld [vmem:[#allocation2 + $0x48] sm:$0xff]  ;;  %v226_v30 = vld [vmem:[#allocation7 + $0x58] sm:$0xff]  ;;  %v225_v31 = vld [vmem:[#allocation7 + $0x50] sm:$0xff] }
  0x22   :  { %155 = vmatpush.msra.mxu0 %v140_v5  ;;  %v224_v32 = vld [vmem:[#allocation7 + $0x48] sm:$0xff]  ;;  %v223_v33 = vld [vmem:[#allocation7 + $0x40] sm:$0xff]  ;;  %v124_v34 = vld [vmem:[#allocation2 + $0x50] sm:$0xff] }
  0x23   :  { %236 = vmatpush.msra.mxu1 %v229_v26  ;;  %v222_v35 = vld [vmem:[#allocation7 + $0x38] sm:$0xff]  ;;  %v221_v36 = vld [vmem:[#allocation7 + $0x30] sm:$0xff]  ;;  %v220_v37 = vld [vmem:[#allocation7 + $0x28] sm:$0xff] }
  0x24   :  { %156 = vmatpush.msra.mxu0 %v139_v6  ;;  %v219_v38 = vld [vmem:[#allocation7 + $0x20] sm:$0xff]  ;;  %v125_v39 = vld [vmem:[#allocation2 + $0x58] sm:$0xff]  ;;  %v217_v41 = vld [vmem:[#allocation7 + $0x10] sm:$0xff] }
  0x25   :  { %237 = vmatpush.msra.mxu1 %v228_v27  ;;  %v218_v40 = vld [vmem:[#allocation7 + $0x18] sm:$0xff]  ;;  %v216_v42 = vld [vmem:[#allocation7 + $0x8] sm:$0xff]  ;;  %v126_v43 = vld [vmem:[#allocation2 + $0x60] sm:$0xff] }
  0x26   :  { %157 = vmatpush.msra.mxu0 %v138_v7  ;;  %v215_v44 = vld [vmem:[#allocation7] sm:$0xff]  ;;  %v127_v45 = vld [vmem:[#allocation2 + $0x68] sm:$0xff]  ;;  %v128_v46 = vld [vmem:[#allocation2 + $0x70] sm:$0xff] }
  0x27   :  { %238 = vmatpush.msra.mxu1 %v227_v28  ;;  %v129_v47 = vld [vmem:[#allocation2 + $0x78] sm:$0xff]  ;;  %v829_v48 = vld [vmem:[%s906_s2] ss:$0 sm:$0xff]  ;;  %v314_v5 = vld [vmem:[#allocation8 + $0x70] sm:$0xff] }
  0x28   :  { %158 = vmatpush.msra.mxu0 %v137_v8  ;;  %v315_v3 = vld [vmem:[#allocation8 + $0x78] sm:$0xff]  ;;  %v415_v6 = vld [vmem:[#allocation10 + $0x70] sm:$0xff]  ;;  %v313_v7 = vld [vmem:[#allocation8 + $0x68] sm:$0xff] }
  0x29   :  { %239 = vmatpush.msra.mxu1 %v226_v30  ;;  %v416_v4 = vld [vmem:[#allocation10 + $0x78] sm:$0xff]  ;;  %320 = vmatpush.msra.mxu2 %v315_v3  ;;  %v414_v8 = vld [vmem:[#allocation10 + $0x68] sm:$0xff]  ;;  %v306_v25 = vld [vmem:[#allocation8 + $0x30] sm:$0xff] }
  0x2a   :  { %159 = vmatpush.msra.mxu0 %v136_v9  ;;  %421 = vmatpush.msra.mxu3 %v416_v4  ;;  %v407_v26 = vld [vmem:[#allocation10 + $0x30] sm:$0xff]  ;;  %v305_v27 = vld [vmem:[#allocation8 + $0x28] sm:$0xff] }
  0x2b   :  { %240 = vmatpush.msra.mxu1 %v225_v31  ;;  %321 = vmatpush.msra.mxu2 %v314_v5  ;;  %v406_v28 = vld [vmem:[#allocation10 + $0x28] sm:$0xff]  ;;  %v304_v31 = vld [vmem:[#allocation8 + $0x20] sm:$0xff] }
  0x2c   :  { %160 = vmatpush.msra.mxu0 %v135_v10  ;;  %422 = vmatpush.msra.mxu3 %v415_v6 }
  0x2d   :  { %241 = vmatpush.msra.mxu1 %v224_v32  ;;  %322 = vmatpush.msra.mxu2 %v313_v7  ;;  %v405_v32 = vld [vmem:[#allocation10 + $0x20] sm:$0xff] }
  0x2e   :  { %161 = vmatpush.msra.mxu0 %v134_v11  ;;  %423 = vmatpush.msra.mxu3 %v414_v8  ;;  %v312_v11 = vld [vmem:[#allocation8 + $0x60] sm:$0xff] }
  0x2f   :  { %242 = vmatpush.msra.mxu1 %v223_v33  ;;  %323 = vmatpush.msra.mxu2 %v312_v11  ;;  %v303_v33 = vld [vmem:[#allocation8 + $0x18] sm:$0xff] }
  0x30   :  { %162 = vmatpush.msra.mxu0 %v133_v12  ;;  %v413_v12 = vld [vmem:[#allocation10 + $0x60] sm:$0xff] }
  0x31   :  { %243 = vmatpush.msra.mxu1 %v222_v35  ;;  %424 = vmatpush.msra.mxu3 %v413_v12  ;;  %v302_v35 = vld [vmem:[#allocation8 + $0x10] sm:$0xff] }
  0x32   :  { %163 = vmatpush.msra.mxu0 %v132_v13  ;;  %v311_v13 = vld [vmem:[#allocation8 + $0x58] sm:$0xff] }
  0x33   :  { %244 = vmatpush.msra.mxu1 %v221_v36  ;;  %324 = vmatpush.msra.mxu2 %v311_v13  ;;  %v403_v36 = vld [vmem:[#allocation10 + $0x10] sm:$0xff] }
  0x34   :  { %164 = vmatpush.msra.mxu0 %v131_v14  ;;  %v412_v14 = vld [vmem:[#allocation10 + $0x58] sm:$0xff] }
  0x35   :  { %245 = vmatpush.msra.mxu1 %v220_v37  ;;  %425 = vmatpush.msra.mxu3 %v412_v14  ;;  %v301_v37 = vld [vmem:[#allocation8 + $0x8] sm:$0xff] }
  0x36   :  { %165 = vmatpush.msra.mxu0 %v130_v15  ;;  %v310_v15 = vld [vmem:[#allocation8 + $0x50] sm:$0xff] }
  0x37   :  { %166 = vmatmul.f32.vlgmr.msra.gmra.mxu0 %v114_v16  ;;  %246 = vmatpush.msra.mxu1 %v219_v38  ;;  %v411_v16 = vld [vmem:[#allocation10 + $0x50] sm:$0xff]  ;;  %v402_v38 = vld [vmem:[#allocation10 + $0x8] sm:$0xff] }
  0x38   :  { %325 = vmatpush.msra.mxu2 %v310_v15  ;;  %426 = vmatpush.msra.mxu3 %v411_v16 }
  0x39   :  { %247 = vmatpush.msra.mxu1 %v218_v40 }
  0x3b   :  { %248 = vmatpush.msra.mxu1 %v217_v41  ;;  %v300_v41 = vld [vmem:[#allocation8] sm:$0xff] }
  0x3d   :  { %249 = vmatpush.msra.mxu1 %v216_v42  ;;  %v401_v42 = vld [vmem:[#allocation10] sm:$0xff] }
  0x3f   :  { %169 = vmatmul.f32.gmra.mxu0 %v115_v17  ;;  %250 = vmatpush.msra.mxu1 %v215_v44  ;;  %v309_v17 = vld [vmem:[#allocation8 + $0x48] sm:$0xff] }
  0x40   :  { %326 = vmatpush.msra.mxu2 %v309_v17 }
  0x47   :  { %172 = vmatmul.f32.gmra.mxu0 %v116_v18  ;;  %v410_v18 = vld [vmem:[#allocation10 + $0x48] sm:$0xff] }
  0x48   :  { %427 = vmatpush.msra.mxu3 %v410_v18  ;;  %v853_v18 = vld [vmem:[%s910_s6] ss:$0 sm:$0xff]  ;;  %s739_s6 = smov [#allocation11]  }
  0x4f   :  { %175 = vmatmul.f32.gmra.mxu0 %v117_v19 }
  0x57   :  { %178 = vmatmul.f32.gmra.mxu0 %v118_v20 }
  0x5f   :  { %181 = vmatmul.f32.gmra.mxu0 %v119_v21  ;;  %v308_v21 = vld [vmem:[#allocation8 + $0x40] sm:$0xff] }
  0x60   :  { %327 = vmatpush.msra.mxu2 %v308_v21 }
  0x67   :  { %184 = vmatmul.f32.gmra.mxu0 %v120_v22  ;;  %v409_v22 = vld [vmem:[#allocation10 + $0x40] sm:$0xff] }
  0x68   :  { %428 = vmatpush.msra.mxu3 %v409_v22 }
  0x6f   :  { %187 = vmatmul.f32.gmra.mxu0 %v121_v23  ;;  %v307_v23 = vld [vmem:[#allocation8 + $0x38] sm:$0xff] }
  0x70   :  { %328 = vmatpush.msra.mxu2 %v307_v23 }
  0x72   :  { %329 = vmatpush.msra.mxu2 %v306_v25 }
  0x74   :  { %330 = vmatpush.msra.mxu2 %v305_v27 }
  0x76   :  { %331 = vmatpush.msra.mxu2 %v304_v31 }
  0x77   :  { %190 = vmatmul.f32.gmra.mxu0 %v122_v24  ;;  %v408_v24 = vld [vmem:[#allocation10 + $0x38] sm:$0xff] }
  0x78   :  { %429 = vmatpush.msra.mxu3 %v408_v24  ;;  %332 = vmatpush.msra.mxu2 %v303_v33 }
  0x7a   :  { %430 = vmatpush.msra.mxu3 %v407_v26  ;;  %333 = vmatpush.msra.mxu2 %v302_v35 }
  0x7c   :  { %431 = vmatpush.msra.mxu3 %v406_v28  ;;  %334 = vmatpush.msra.mxu2 %v301_v37 }
  0x7e   :  { %432 = vmatpush.msra.mxu3 %v405_v32  ;;  %335 = vmatpush.msra.mxu2 %v300_v41 }
  0x7f   :  { %193 = vmatmul.f32.gmra.mxu0 %v123_v29 }
  0x87   :  { %196 = vmatmul.f32.gmra.mxu0 %v124_v34  ;;  %v404_v34 = vld [vmem:[#allocation10 + $0x18] sm:$0xff] }
  0x88   :  { %433 = vmatpush.msra.mxu3 %v404_v34 }
  0x8a   :  { %434 = vmatpush.msra.mxu3 %v403_v36 }
  0x8c   :  { %435 = vmatpush.msra.mxu3 %v402_v38 }
  0x8e   :  { %436 = vmatpush.msra.mxu3 %v401_v42 }
  0x8f   :  { %199 = vmatmul.f32.gmra.mxu0 %v125_v39 }
  0x97   :  { %202 = vmatmul.f32.gmra.mxu0 %v126_v43 }
  0x9f   :  { %205 = vmatmul.f32.gmra.mxu0 %v127_v45 }
  0xa7   :  { %208 = vmatmul.f32.gmra.mxu0 %v128_v46 }
  0xaf   :  { %211 = vmatmul.f32.gmra.mxu0 %v129_v47 }
  0xb4   :  { %v167_v49 = vpop.f32.mrf.mxu0 }
  0xb5   :  { %v168_v50 = vadd.f32 %v829_v48, %v167_v49 }
  0xb7   :  { %251 = vmatmul.f32.vlgmr.msra.gmra.mxu1 %v168_v50  ;;  %v551_v50 = vld [vmem:[%s908_s4] ss:$0 sm:$0xff] }
  0xbc   :  { %v170_v51 = vpop.f32.mrf.mxu0 }
  0xbd   :  { %v171_v52 = vadd.f32 %v829_v48, %v170_v51 }
  0xbf   :  { %254 = vmatmul.f32.gmra.mxu1 %v171_v52 }
  0xc4   :  { %v173_v53 = vpop.f32.mrf.mxu0 }
  0xc5   :  { %v174_v54 = vadd.f32 %v829_v48, %v173_v53 }
  0xc7   :  { %257 = vmatmul.f32.gmra.mxu1 %v174_v54 }
  0xcc   :  { %v176_v55 = vpop.f32.mrf.mxu0 }
  0xcd   :  { %v177_v56 = vadd.f32 %v829_v48, %v176_v55 }
  0xcf   :  { %260 = vmatmul.f32.gmra.mxu1 %v177_v56 }
  0xd4   :  { %v179_v57 = vpop.f32.mrf.mxu0 }
  0xd5   :  { %v180_v58 = vadd.f32 %v829_v48, %v179_v57 }
  0xd7   :  { %263 = vmatmul.f32.gmra.mxu1 %v180_v58 }
  0xdc   :  { %v182_v59 = vpop.f32.mrf.mxu0 }
  0xdd   :  { %v183_v60 = vadd.f32 %v829_v48, %v182_v59 }
  0xdf   :  { %266 = vmatmul.f32.gmra.mxu1 %v183_v60 }
  0xe4   :  { %v185_v61 = vpop.f32.mrf.mxu0 }
  0xe5   :  { %v186_v62 = vadd.f32 %v829_v48, %v185_v61 }
  0xe7   :  { %269 = vmatmul.f32.gmra.mxu1 %v186_v62 }
  0xec   :  { %v188_v63 = vpop.f32.mrf.mxu0 }
  0xed   :  { %v189_v0 = vadd.f32 %v829_v48, %v188_v63 }
  0xef   :  { %272 = vmatmul.f32.gmra.mxu1 %v189_v0 }
  0xf4   :  { %v191_v1 = vpop.f32.mrf.mxu0 }
  0xf5   :  { %v192_v2 = vadd.f32 %v829_v48, %v191_v1 }
  0xf7   :  { %275 = vmatmul.f32.gmra.mxu1 %v192_v2 }
  0xfc   :  { %v194_v9 = vpop.f32.mrf.mxu0 }
  0xfd   :  { %v195_v10 = vadd.f32 %v829_v48, %v194_v9 }
  0xff   :  { %278 = vmatmul.f32.gmra.mxu1 %v195_v10 }
 0x104   :  { %v197_v19 = vpop.f32.mrf.mxu0 }
 0x105   :  { %v198_v20 = vadd.f32 %v829_v48, %v197_v19  ;;  %v858_v19 = vld [vmem:[%s912_s8] ss:$0 sm:$0xff]  ;;  %s506_s8 = sshll.u32 %s739_s6, 4  ;;  %s507_s8 = int_to_ptr.vmem [resolvable:$true] %s506_s8 }
 0x107   :  { %281 = vmatmul.f32.gmra.mxu1 %v198_v20 }
 0x10c   :  { %v200_v29 = vpop.f32.mrf.mxu0 }
 0x10d   :  { %v201_v30 = vadd.f32 %v829_v48, %v200_v29 }
 0x10f   :  { %284 = vmatmul.f32.gmra.mxu1 %v201_v30 }
 0x114   :  { %v203_v39 = vpop.f32.mrf.mxu0 }
 0x115   :  { %v204_v40 = vadd.f32 %v829_v48, %v203_v39 }
 0x117   :  { %287 = vmatmul.f32.gmra.mxu1 %v204_v40 }
 0x11c   :  { %v206_v43 = vpop.f32.mrf.mxu0 }
 0x11d   :  { %v207_v44 = vadd.f32 %v829_v48, %v206_v43 }
 0x11f   :  { %290 = vmatmul.f32.gmra.mxu1 %v207_v44 }
 0x124   :  { %v209_v45 = vpop.f32.mrf.mxu0 }
 0x125   :  { %v210_v46 = vadd.f32 %v829_v48, %v209_v45 }
 0x127   :  { %293 = vmatmul.f32.gmra.mxu1 %v210_v46 }
 0x12c   :  { %v212_v47 = vpop.f32.mrf.mxu0 }
 0x12d   :  { %v213_v49 = vadd.f32 %v829_v48, %v212_v47 }
 0x12f   :  { %296 = vmatmul.f32.gmra.mxu1 %v213_v49 }
 0x134   :  { %v252_v51 = vpop.f32.mrf.mxu1 }
 0x135   :  { %v253_v52 = vadd.f32 %v551_v50, %v252_v51 }
 0x137   :  { %336 = vmatmul.f32.vlgmr.msra.gmra.mxu2 %v253_v52  ;;  %437 = vmatmul.f32.vlgmr.msra.gmra.mxu3 %v253_v52 }
 0x13c   :  { %v255_v53 = vpop.f32.mrf.mxu1 }
 0x13d   :  { %v256_v54 = vadd.f32 %v551_v50, %v255_v53 }
 0x13f   :  { %339 = vmatmul.f32.gmra.mxu2 %v256_v54  ;;  %440 = vmatmul.f32.gmra.mxu3 %v256_v54 }
 0x144   :  { %v258_v55 = vpop.f32.mrf.mxu1 }
 0x145   :  { %v259_v56 = vadd.f32 %v551_v50, %v258_v55 }
 0x147   :  { %342 = vmatmul.f32.gmra.mxu2 %v259_v56  ;;  %443 = vmatmul.f32.gmra.mxu3 %v259_v56 }
 0x14c   :  { %v261_v57 = vpop.f32.mrf.mxu1 }
 0x14d   :  { %v262_v58 = vadd.f32 %v551_v50, %v261_v57 }
 0x14f   :  { %345 = vmatmul.f32.gmra.mxu2 %v262_v58  ;;  %446 = vmatmul.f32.gmra.mxu3 %v262_v58 }
 0x154   :  { %v264_v48 = vpop.f32.mrf.mxu1 }
 0x155   :  { %v265_v59 = vadd.f32 %v551_v50, %v264_v48 }
 0x157   :  { %348 = vmatmul.f32.gmra.mxu2 %v265_v59  ;;  %449 = vmatmul.f32.gmra.mxu3 %v265_v59 }
 0x15c   :  { %v267_v60 = vpop.f32.mrf.mxu1 }
 0x15d   :  { %v268_v61 = vadd.f32 %v551_v50, %v267_v60 }
 0x15f   :  { %351 = vmatmul.f32.gmra.mxu2 %v268_v61  ;;  %452 = vmatmul.f32.gmra.mxu3 %v268_v61 }
 0x164   :  { %v270_v62 = vpop.f32.mrf.mxu1 }
 0x165   :  { %v271_v63 = vadd.f32 %v551_v50, %v270_v62 }
 0x167   :  { %354 = vmatmul.f32.gmra.mxu2 %v271_v63  ;;  %455 = vmatmul.f32.gmra.mxu3 %v271_v63 }
 0x16c   :  { %v273_v0 = vpop.f32.mrf.mxu1 }
 0x16d   :  { %v274_v1 = vadd.f32 %v551_v50, %v273_v0 }
 0x16f   :  { %357 = vmatmul.f32.gmra.mxu2 %v274_v1  ;;  %458 = vmatmul.f32.gmra.mxu3 %v274_v1 }
 0x174   :  { %v276_v2 = vpop.f32.mrf.mxu1 }
 0x175   :  { %v277_v3 = vadd.f32 %v551_v50, %v276_v2 }
 0x177   :  { %360 = vmatmul.f32.gmra.mxu2 %v277_v3  ;;  %461 = vmatmul.f32.gmra.mxu3 %v277_v3 }
 0x17c   :  { %v279_v4 = vpop.f32.mrf.mxu1 }
 0x17d   :  { %v280_v5 = vadd.f32 %v551_v50, %v279_v4 }
 0x17f   :  { %363 = vmatmul.f32.gmra.mxu2 %v280_v5  ;;  %464 = vmatmul.f32.gmra.mxu3 %v280_v5 }
 0x184   :  { %v282_v6 = vpop.f32.mrf.mxu1 }
 0x185   :  { %v283_v7 = vadd.f32 %v551_v50, %v282_v6 }
 0x187   :  { %366 = vmatmul.f32.gmra.mxu2 %v283_v7  ;;  %467 = vmatmul.f32.gmra.mxu3 %v283_v7 }
 0x18c   :  { %v285_v8 = vpop.f32.mrf.mxu1 }
 0x18d   :  { %v286_v9 = vadd.f32 %v551_v50, %v285_v8 }
 0x18f   :  { %369 = vmatmul.f32.gmra.mxu2 %v286_v9  ;;  %470 = vmatmul.f32.gmra.mxu3 %v286_v9 }
 0x194   :  { %v288_v10 = vpop.f32.mrf.mxu1 }
 0x195   :  { %v289_v11 = vadd.f32 %v551_v50, %v288_v10 }
 0x197   :  { %372 = vmatmul.f32.gmra.mxu2 %v289_v11  ;;  %473 = vmatmul.f32.gmra.mxu3 %v289_v11 }
 0x19c   :  { %v291_v12 = vpop.f32.mrf.mxu1 }
 0x19d   :  { %v292_v13 = vadd.f32 %v551_v50, %v291_v12 }
 0x19f   :  { %375 = vmatmul.f32.gmra.mxu2 %v292_v13  ;;  %476 = vmatmul.f32.gmra.mxu3 %v292_v13 }
 0x1a4   :  { %v294_v14 = vpop.f32.mrf.mxu1 }
 0x1a5   :  { %v295_v15 = vadd.f32 %v551_v50, %v294_v14 }
 0x1a7   :  { %378 = vmatmul.f32.gmra.mxu2 %v295_v15  ;;  %479 = vmatmul.f32.gmra.mxu3 %v295_v15 }
 0x1ac   :  { %v297_v16 = vpop.f32.mrf.mxu1 }
 0x1ad   :  { %v298_v17 = vadd.f32 %v551_v50, %v297_v16 }
 0x1af   :  { %381 = vmatmul.f32.gmra.mxu2 %v298_v17  ;;  %482 = vmatmul.f32.gmra.mxu3 %v298_v17 }
 0x1ba   :  { %v337_v20 = vpop.f32.mrf.mxu2  ;;  %v438_v21 = vpop.f32.mrf.mxu3 }
 0x1bb   :  { %v338_v22 = vadd.f32 %v853_v18, %v337_v20  ;;  %v439_v23 = vadd.f32 %v858_v19, %v438_v21 }
 0x1bd   :  { %385 = vst [vmem:[#allocation11] sm:$0xff] %v338_v22 }
 0x1be   :  { %486 = vst [vmem:[#allocation12] sm:$0xff] %v439_v23 }
 0x1c2   :  { %v340_v24 = vpop.f32.mrf.mxu2  ;;  %v441_v25 = vpop.f32.mrf.mxu3 }
 0x1c3   :  { %v341_v26 = vadd.f32 %v853_v18, %v340_v24  ;;  %v442_v27 = vadd.f32 %v858_v19, %v441_v25 }
 0x1c5   :  { %386 = vst [vmem:[#allocation11 + $0x8] sm:$0xff] %v341_v26 }
 0x1c6   :  { %487 = vst [vmem:[#allocation12 + $0x8] sm:$0xff] %v442_v27 }
 0x1ca   :  { %v343_v28 = vpop.f32.mrf.mxu2  ;;  %v444_v29 = vpop.f32.mrf.mxu3 }
 0x1cb   :  { %v344_v30 = vadd.f32 %v853_v18, %v343_v28  ;;  %v445_v31 = vadd.f32 %v858_v19, %v444_v29 }
 0x1cd   :  { %387 = vst [vmem:[#allocation11 + $0x10] sm:$0xff] %v344_v30 }
 0x1ce   :  { %488 = vst [vmem:[#allocation12 + $0x10] sm:$0xff] %v445_v31 }
 0x1d2   :  { %v346_v32 = vpop.f32.mrf.mxu2  ;;  %v447_v33 = vpop.f32.mrf.mxu3 }
 0x1d3   :  { %v347_v34 = vadd.f32 %v853_v18, %v346_v32  ;;  %v448_v35 = vadd.f32 %v858_v19, %v447_v33 }
 0x1d5   :  { %388 = vst [vmem:[#allocation11 + $0x18] sm:$0xff] %v347_v34 }
 0x1d6   :  { %489 = vst [vmem:[#allocation12 + $0x18] sm:$0xff] %v448_v35 }
 0x1da   :  { %v349_v36 = vpop.f32.mrf.mxu2  ;;  %v450_v37 = vpop.f32.mrf.mxu3 }
 0x1db   :  { %v350_v38 = vadd.f32 %v853_v18, %v349_v36  ;;  %v451_v39 = vadd.f32 %v858_v19, %v450_v37 }
 0x1dd   :  { %389 = vst [vmem:[#allocation11 + $0x20] sm:$0xff] %v350_v38 }
 0x1de   :  { %490 = vst [vmem:[#allocation12 + $0x20] sm:$0xff] %v451_v39 }
 0x1e2   :  { %v352_v40 = vpop.f32.mrf.mxu2  ;;  %v453_v41 = vpop.f32.mrf.mxu3 }
 0x1e3   :  { %v353_v42 = vadd.f32 %v853_v18, %v352_v40  ;;  %v454_v43 = vadd.f32 %v858_v19, %v453_v41 }
 0x1e5   :  { %390 = vst [vmem:[#allocation11 + $0x28] sm:$0xff] %v353_v42 }
 0x1e6   :  { %491 = vst [vmem:[#allocation12 + $0x28] sm:$0xff] %v454_v43 }
 0x1ea   :  { %v355_v44 = vpop.f32.mrf.mxu2  ;;  %v456_v45 = vpop.f32.mrf.mxu3 }
 0x1eb   :  { %v356_v46 = vadd.f32 %v853_v18, %v355_v44  ;;  %v457_v47 = vadd.f32 %v858_v19, %v456_v45 }
 0x1ed   :  { %391 = vst [vmem:[#allocation11 + $0x30] sm:$0xff] %v356_v46 }
 0x1ee   :  { %492 = vst [vmem:[#allocation12 + $0x30] sm:$0xff] %v457_v47 }
 0x1f2   :  { %v358_v49 = vpop.f32.mrf.mxu2  ;;  %v459_v50 = vpop.f32.mrf.mxu3 }
 0x1f3   :  { %v359_v51 = vadd.f32 %v853_v18, %v358_v49  ;;  %v460_v52 = vadd.f32 %v858_v19, %v459_v50 }
 0x1f5   :  { %392 = vst [vmem:[#allocation11 + $0x38] sm:$0xff] %v359_v51 }
 0x1f6   :  { %493 = vst [vmem:[#allocation12 + $0x38] sm:$0xff] %v460_v52 }
 0x1fa   :  { %v361_v53 = vpop.f32.mrf.mxu2  ;;  %v462_v54 = vpop.f32.mrf.mxu3 }
 0x1fb   :  { %v362_v55 = vadd.f32 %v853_v18, %v361_v53  ;;  %v463_v56 = vadd.f32 %v858_v19, %v462_v54 }
 0x1fd   :  { %393 = vst [vmem:[#allocation11 + $0x40] sm:$0xff] %v362_v55 }
 0x1fe   :  { %494 = vst [vmem:[#allocation12 + $0x40] sm:$0xff] %v463_v56 }
 0x202   :  { %v364_v57 = vpop.f32.mrf.mxu2  ;;  %v465_v58 = vpop.f32.mrf.mxu3 }
 0x203   :  { %v365_v48 = vadd.f32 %v853_v18, %v364_v57  ;;  %v466_v59 = vadd.f32 %v858_v19, %v465_v58 }
 0x205   :  { %394 = vst [vmem:[#allocation11 + $0x48] sm:$0xff] %v365_v48 }
 0x206   :  { %495 = vst [vmem:[#allocation12 + $0x48] sm:$0xff] %v466_v59 }
 0x20a   :  { %v367_v60 = vpop.f32.mrf.mxu2  ;;  %v468_v61 = vpop.f32.mrf.mxu3 }
 0x20b   :  { %v368_v62 = vadd.f32 %v853_v18, %v367_v60  ;;  %v469_v63 = vadd.f32 %v858_v19, %v468_v61 }
 0x20d   :  { %395 = vst [vmem:[#allocation11 + $0x50] sm:$0xff] %v368_v62 }
 0x20e   :  { %496 = vst [vmem:[#allocation12 + $0x50] sm:$0xff] %v469_v63 }
 0x212   :  { %v370_v0 = vpop.f32.mrf.mxu2  ;;  %v471_v1 = vpop.f32.mrf.mxu3 }
 0x213   :  { %v371_v2 = vadd.f32 %v853_v18, %v370_v0  ;;  %v472_v3 = vadd.f32 %v858_v19, %v471_v1 }
 0x215   :  { %396 = vst [vmem:[#allocation11 + $0x58] sm:$0xff] %v371_v2 }
 0x216   :  { %497 = vst [vmem:[#allocation12 + $0x58] sm:$0xff] %v472_v3 }
 0x21a   :  { %v373_v4 = vpop.f32.mrf.mxu2  ;;  %v474_v5 = vpop.f32.mrf.mxu3 }
 0x21b   :  { %v374_v6 = vadd.f32 %v853_v18, %v373_v4  ;;  %v475_v7 = vadd.f32 %v858_v19, %v474_v5 }
 0x21d   :  { %397 = vst [vmem:[#allocation11 + $0x60] sm:$0xff] %v374_v6 }
 0x21e   :  { %498 = vst [vmem:[#allocation12 + $0x60] sm:$0xff] %v475_v7 }
 0x222   :  { %v376_v8 = vpop.f32.mrf.mxu2  ;;  %v477_v9 = vpop.f32.mrf.mxu3 }
 0x223   :  { %v377_v10 = vadd.f32 %v853_v18, %v376_v8  ;;  %v478_v11 = vadd.f32 %v858_v19, %v477_v9 }
 0x225   :  { %398 = vst [vmem:[#allocation11 + $0x68] sm:$0xff] %v377_v10 }
 0x226   :  { %499 = vst [vmem:[#allocation12 + $0x68] sm:$0xff] %v478_v11 }
 0x22a   :  { %v379_v12 = vpop.f32.mrf.mxu2  ;;  %v480_v13 = vpop.f32.mrf.mxu3 }
 0x22b   :  { %v380_v14 = vadd.f32 %v853_v18, %v379_v12  ;;  %v481_v15 = vadd.f32 %v858_v19, %v480_v13 }
 0x22d   :  { %399 = vst [vmem:[#allocation11 + $0x70] sm:$0xff] %v380_v14 }
 0x22e   :  { %500 = vst [vmem:[#allocation12 + $0x70] sm:$0xff] %v481_v15 }
 0x232   :  { %v382_v16 = vpop.f32.mrf.mxu2  ;;  %v483_v17 = vpop.f32.mrf.mxu3 }
 0x233   :  { %v383_v20 = vadd.f32 %v853_v18, %v382_v16  ;;  %v484_v21 = vadd.f32 %v858_v19, %v483_v17 }
 0x235   :  { %400 = vst [vmem:[#allocation11 + $0x78] sm:$0xff] %v383_v20 }
 0x236   :  { %501 = vst [vmem:[#allocation12 + $0x78] sm:$0xff] %v484_v21  ;;  %514 = dma.vmem_to_hbm [thread:$0]  %s507_s8, 2048, %s509_s25, [#allocation4], %s733_s21, %s733_s21, %s734_s22  }
 0x237   :  { %527 = dma.vmem_to_hbm [thread:$0]  %s520_s1, 2048, %s522_s28, [#allocation13], %s733_s21, %s733_s21, %s734_s22  }
 0x238   :  { %728 = dma.done.wait [#allocation4], 2048  }
 0x239   :  { %729 = vsyncadd [#allocation4], 4294965248 }
 0x23a   :  { %730 = dma.done.wait [#allocation13], 2048  }
 0x23b   :  { %731 = vsyncadd [#allocation13], 4294965248 }
 0x23c   :  { %536 = vsyncpa [#allocation3], 1 }
 0x23d   :  { %537 = vsyncpa [#allocation6], 1 }
 0x23e   :  { %538 = vsyncpa [#allocation9], 1 }
 0x23f   :  { %539 = vsyncpa [#allocation4], 1 }
 0x240   :  { %540 = vsyncpa [#allocation13], 1 }

</bundles_post_ra>
